<compile_context>
chip_gen: v5e
topology: v5e:2x2
jax: 0.10.0
libtpu: 0.0.40
codegen_flags: <defaults>
</compile_context>

<pallas_src>
import functools
import math

import jax
import jax.numpy as jnp
from jax.experimental import pallas as pl
from jax.experimental.pallas import tpu as pltpu


_TARGET_BLOCK_BYTES = 1 << 20   # ~1 MiB per block (512x512 f32, per review)
_DEFAULT_VMEM_CAP = 48 << 20    # conservative cap, safe on v7x (64 MiB VMEM)


def _vmem_cap_bytes():
    """Per-generation VMEM cap (~3/4 of physical), v7x-safe default."""
    try:
        cap = pltpu.get_tpu_info().vmem_capacity_bytes
        return int(cap * 3 // 4)
    except Exception:
        return _DEFAULT_VMEM_CAP


# ----------------------------------------------------------------------------
# Kernels
# ----------------------------------------------------------------------------
def _swap_last_two_kernel(x_ref, o_ref):
    """Transpose the last two axes of the current (bl, tm, tn) block."""
    o_ref[...] = jnp.transpose(x_ref[...], (0, 2, 1))


def _general_permute_kernel(x_ref, o_ref, *, perm):
    """Whole-array permutation (fallback for exotic core perms)."""
    o_ref[...] = jnp.transpose(x_ref[...], perm)


# ----------------------------------------------------------------------------
# Permutation factoring: merge runs of input axes that stay adjacent/in-order
# ----------------------------------------------------------------------------
def _merge_perm(shape, perm):
    """Return (merged_input_shape, core_perm) such that
    transpose(x, perm) == transpose(x.reshape(merged_input_shape), core_perm)
                              .reshape(output_shape)."""
    runs = [[perm[0]]]
    for p in perm[1:]:
        if p == runs[-1][-1] + 1:
            runs[-1].append(p)
        else:
            runs.append([p])
    runs_by_input = sorted(range(len(runs)), key=lambda r: runs[r][0])
    merged_in_shape = tuple(
        math.prod(shape[a] for a in runs[r]) for r in runs_by_input
    )
    run_to_merged_axis = {r: i for i, r in enumerate(runs_by_input)}
    core_perm = tuple(run_to_merged_axis[j] for j in range(len(runs)))
    return merged_in_shape, core_perm


# ----------------------------------------------------------------------------
# Tiled, pipelined swap of the last two axes
# ----------------------------------------------------------------------------
def _pick_tile(dim, target):
    """Full extent if it fits the target, else a multiple-of-128 tile.

    128 is a multiple of every sublane pack (8 f32 / 16 bf16 / 32 int8), so a
    128-aligned tile is legal and lane-dense on both the input and the
    transposed output side; a full-extent tile is always legal.
    """
    if dim <= target:
        return dim
    return target  # target is already a multiple of 128


def _swap_last_two(x):
    """x: (..., M, N) -> (..., N, M) via a tiled, pipelined Pallas kernel."""
    lead = x.shape[:-2]
    M, N = x.shape[-2], x.shape[-1]
    L = math.prod(lead) if lead else 1
    itemsize = x.dtype.itemsize

    x3 = x.reshape(L, M, N)  # free reshape: collapse leading axes

    # Tile size from the byte budget: ~512 for f32, ~640 for bf16, 1024 int8.
    target = max(128, (math.isqrt(_TARGET_BLOCK_BYTES // itemsize) // 128) * 128)
    tm = _pick_tile(M, target)
    tn = _pick_tile(N, target)

    # Batch several leading slabs per block when a single (tm, tn) slab is
    # small, so per-grid-step overhead does not dominate the DMA time.
    slab_bytes = tm * tn * itemsize
    bl = int(max(1, min(L, _TARGET_BLOCK_BYTES // max(slab_bytes, 1))))

    grid = (pl.cdiv(L, bl), pl.cdiv(M, tm), pl.cdiv(N, tn))

    # VMEM budget from the real pipeline footprint: 2 buffers each for the
    # input and output block, plus headroom, capped per-generation.
    block_bytes = bl * slab_bytes
    needed = 4 * block_bytes + (2 << 20)
    vmem_limit = int(min(_vmem_cap_bytes(), max(needed, 8 << 20)))

    cost = pl.CostEstimate(
        flops=0, transcendentals=0, bytes_accessed=2 * x.size * itemsize
    )

    y3 = pl.pallas_call(
        _swap_last_two_kernel,
        out_shape=jax.ShapeDtypeStruct((L, N, M), x.dtype),
        grid=grid,
        in_specs=[pl.BlockSpec((bl, tm, tn), lambda l, i, j: (l, i, j))],
        out_specs=pl.BlockSpec((bl, tn, tm), lambda l, i, j: (l, j, i)),
        compiler_params=pltpu.CompilerParams(
            # All axes independent (no reduction): lets v7x shard the tile
            # grid across both TensorCores even when L == 1.
            dimension_semantics=("parallel", "parallel", "parallel"),
            vmem_limit_bytes=vmem_limit,
        ),
        cost_estimate=cost,
    )(x3)
    return y3.reshape(lead + (N, M))


# ----------------------------------------------------------------------------
# Core Pallas permute on the merged axes
# ----------------------------------------------------------------------------
def _core_permute(x, core_perm):
    rank = x.ndim
    if core_perm == tuple(range(rank)):
        return x  # identity

    # After run-merging, the common permutes reduce to a swap of the last two
    # merged axes (rank-2 (1,0) or rank-3 (0,2,1)); route them all through the
    # tiled, pipelined path.
    if rank >= 2 and core_perm == tuple(range(rank - 2)) + (rank - 1, rank - 2):
        return _swap_last_two(x)

    # Fallback: whole array in VMEM (exotic core permutations only).
    # TODO(synk): tile exotic core permutations; this path is unpipelined and
    # limited by the VMEM cap for large inputs.
    out_shape = tuple(x.shape[a] for a in core_perm)
    itemsize = x.dtype.itemsize
    total_bytes = 2 * x.size * itemsize
    vmem_limit = int(min(_vmem_cap_bytes(), max(total_bytes + (4 << 20), 8 << 20)))
    kernel = functools.partial(_general_permute_kernel, perm=core_perm)
    vmem = pltpu.MemorySpace.VMEM
    return pl.pallas_call(
        kernel,
        out_shape=jax.ShapeDtypeStruct(out_shape, x.dtype),
        in_specs=[pl.BlockSpec(memory_space=vmem)],
        out_specs=pl.BlockSpec(memory_space=vmem),
        compiler_params=pltpu.CompilerParams(vmem_limit_bytes=vmem_limit),
        cost_estimate=pl.CostEstimate(
            flops=0, transcendentals=0, bytes_accessed=total_bytes
        ),
    )(x)


# ----------------------------------------------------------------------------
# Public entry point: equivalent of  Transpose(perm)(x) == x.permute(perm)
# ----------------------------------------------------------------------------
def transpose_forward(x, perm):
    if x.ndim == 0:
        return x
    perm = tuple(int(p) % x.ndim for p in perm)
    assert sorted(perm) == list(range(x.ndim)), f"invalid permutation {perm}"
    if perm == tuple(range(x.ndim)):
        return x
    out_shape = tuple(x.shape[p] for p in perm)

    merged_in_shape, core_perm = _merge_perm(x.shape, perm)
    x_merged = x.reshape(merged_in_shape)      # free (outside the kernel)
    y_merged = _core_permute(x_merged, core_perm)
    return y_merged.reshape(out_shape)         # free (outside the kernel)


class Transpose:
    """Mirror of the PyTorch module: Transpose(perm)(x) == x.permute(perm)."""

    def __init__(self, transpose):
        self.transpose = tuple(transpose)

    def __call__(self, x):
        return transpose_forward(x, self.transpose)


# ----------------------------------------------------------------------------
# Demo / self-test
# ----------------------------------------------------------------------------
if __name__ == "__main__":
    key = jax.random.PRNGKey(0)
    k1, k2, k3, k4, k5 = jax.random.split(key, 5)

    # 1) Typical use: NCHW -> NHWC, i.e. Transpose((0, 2, 3, 1)).
    x = jax.random.normal(k1, (2, 4, 16, 16), dtype=jnp.float32)
    y = jax.block_until_ready(Transpose((0, 2, 3, 1))(x))
    ref = jnp.transpose(x, (0, 2, 3, 1))
    assert y.shape == ref.shape, (y.shape, ref.shape)
    assert jnp.allclose(y, ref), "NCHW->NHWC mismatch"

    # 2) NHWC -> NCHW.
    x2 = jax.random.normal(k2, (2, 16, 16, 4), dtype=jnp.float32)
    y2 = jax.block_until_ready(Transpose((0, 3, 1, 2))(x2))
    assert jnp.allclose(y2, jnp.transpose(x2, (0, 3, 1, 2))), "NHWC->NCHW mismatch"

    # 3) Plain small 2-D transpose (now also goes through the tiled path).
    x3 = jax.random.normal(k3, (32, 128), dtype=jnp.float32)
    y3 = jax.block_until_ready(Transpose((1, 0))(x3))
    assert jnp.allclose(y3, x3.T), "2-D transpose mismatch"

    # 4) 2-D transpose large enough to exercise M-tiling (ragged last block).
    x4 = jax.random.normal(k4, (640, 272), dtype=jnp.float32)
    y4 = jax.block_until_ready(Transpose((1, 0))(x4))
    assert jnp.allclose(y4, x4.T), "tiled 2-D transpose mismatch"

    # 5) bf16 NCHW -> NHWC (exercises packed-dtype transpose path).
    x5 = jax.random.normal(k5, (2, 16, 16, 32), dtype=jnp.bfloat16)
    y5 = jax.block_until_ready(Transpose((0, 2, 3, 1))(x5))
    assert jnp.array_equal(y5, jnp.transpose(x5, (0, 2, 3, 1))), "bf16 mismatch"

    print("KERNEL_OK")
</pallas_src>

<mosaic_0001>
module attributes {stable_mosaic.version = 11 : i64} {
  func.func @_swap_last_two_kernel(%arg0: i32, %arg1: i32, %arg2: i32, %arg3: memref<2x4x256xf32, #tpu.memory_space<vmem>>, %arg4: memref<2x256x4xf32, #tpu.memory_space<vmem>>) attributes {dimension_semantics = [#tpu.dimension_semantics<parallel>, #tpu.dimension_semantics<parallel>, #tpu.dimension_semantics<parallel>], iteration_bounds = array<i64: 1, 1, 1>, scalar_prefetch = 0 : i64, scratch_operands = 0 : i64, tpu.core_type = #tpu.core_type<tc>, window_params = [{transform_indices = @transform_0, window_bounds = array<i64: 2, 4, 256>}, {transform_indices = @transform_1, window_bounds = array<i64: 2, 256, 4>}]} {
    %c0 = arith.constant 0 : index
    %c0_0 = arith.constant 0 : index
    %c0_1 = arith.constant 0 : index
    %0 = vector.load %arg3[%c0, %c0_0, %c0_1] : memref<2x4x256xf32, #tpu.memory_space<vmem>>, vector<2x4x256xf32>
    %1 = tpu.transpose %0, [0, 2, 1] : vector<2x4x256xf32> -> vector<2x256x4xf32>
    %c0_2 = arith.constant 0 : index
    %c0_3 = arith.constant 0 : index
    %c0_4 = arith.constant 0 : index
    %2 = vector.load %arg4[%c0_2, %c0_3, %c0_4] : memref<2x256x4xf32, #tpu.memory_space<vmem>>, vector<2x256x4xf32>
    tpu.vector_store %arg4[%c0_2, %c0_3, %c0_4], %1 {strides = array<i32>} : memref<2x256x4xf32, #tpu.memory_space<vmem>>, vector<2x256x4xf32>,
    return
  }
  func.func @transform_0(%arg0: i32, %arg1: i32, %arg2: i32) -> (i32, i32, i32) {
    %c0_i32 = arith.constant 0 : i32
    return %arg0, %arg1, %arg2 : i32, i32, i32
  }
  func.func @transform_1(%arg0: i32, %arg1: i32, %arg2: i32) -> (i32, i32, i32) {
    %c0_i32 = arith.constant 0 : i32
    return %arg0, %arg2, %arg1 : i32, i32, i32
  }
}

</mosaic_0001>

<bundles_post_ra>
// kernel: tpu_custom_call.1
= control target key start
LH: loop header
LB: loop body
LE: loop exit
PB: predicated region body
PF: predicated region fallthrough
CT: control target
= control target key end

     0   :  { %6 = vsyncpa [#allocation3], 0  ;;  %s267_s9 = smov [#allocation2]   ;;  %s268_s11 = smov 128   ;;  %s539_s0 = inlined_call_operand.hbm [shape: f32[2,4,256], index: 0, kind: input, shape index: {}]   ;;  %s540_s1 = inlined_call_operand.vmem [shape: f32[2,256,4], index: 1, kind: output, shape index: {}]  }
   0x1   :  { %s11_s8 = sshll.u32 %s539_s0, 4  ;;  %s13_s10 = sshll.u32 %s267_s9, 4  ;;  %s12_s8 = int_to_ptr.hbm [resolvable:$true] %s11_s8  ;;  %s14_s10 = int_to_ptr.vmem [resolvable:$true] %s13_s10 }
   0x2   :  { %s269_s12 = smov 8  }
   0x3   :  { %19 = dma.hbm_to_vmem [thread:$0]  %s12_s8, 256, %s14_s10, [#allocation3], %s268_s11, %s268_s11, %s269_s12  }
   0x4   :  { %265 = dma.done.wait [#allocation3], 256  }
   0x5   :  { %266 = vsyncadd [#allocation3], 4294967040  ;;  %v25_v0 = vld [vmem:[#allocation2 + $0x8] sm:$0xff]  ;;  %v24_v1 = vld [vmem:[#allocation2] sm:$0xff]  ;;  %vm167_vm0 = vcmask 31744  }
   0x6   :  { %32 = vst [vmem:[#allocation1 + $0x10] ss:$2 sm:$0xff] %v25_v0 }
   0x7   :  { %28 = vst [vmem:[#allocation1] ss:$2 sm:$0xff] %v24_v1 }
   0xd   :  { %v33_v2 = vld.sshfl [vmem:[#allocation1 + $0x10] sm:$0xff pattern:$0x75316420]  ;;  %v34_v4 = vld.sshfl [vmem:[#allocation1 + $0x18] sm:$0xff pattern:$0x75316420] }
   0xe   :  { %103 = vxpose.xlu1.b32.start.end [1/1] (short) %v33_v2, 128  ;;  %v29_v3 = vld.sshfl [vmem:[#allocation1] sm:$0xff pattern:$0x75316420]  ;;  %v30_v5 = vld.sshfl [vmem:[#allocation1 + $0x8] sm:$0xff pattern:$0x75316420] }
   0xf   :  { %39 = vxpose.xlu0.b32.start.end [1/1] (short) %v29_v3, 128 }
  0x8e   :  { %135 = vxpose.xlu1.b32.start.end [1/1] (short) %v34_v4, 128 }
  0x8f   :  { %71 = vxpose.xlu0.b32.start.end [1/1] (short) %v30_v5, 128 }
  0xb2   :  { %v119_v6 = vpop.trf.xlu1 }
  0xb3   :  { %200 = vst.msk [vmem:[%s540_s1 + $0x100] sm:$0xff] %vm167_vm0, %v119_v6  ;;  %v55_v7 = vpop.trf.xlu0 }
  0xb4   :  { %168 = vst.msk [vmem:[%s540_s1] sm:$0xff] %vm167_vm0, %v55_v7 }
  0xba   :  { %v120_v8 = vpop.trf.xlu1 }
  0xbb   :  { %201 = vst.msk [vmem:[%s540_s1 + $0x108] sm:$0xff] %vm167_vm0, %v120_v8  ;;  %v56_v9 = vpop.trf.xlu0 }
  0xbc   :  { %169 = vst.msk [vmem:[%s540_s1 + $0x8] sm:$0xff] %vm167_vm0, %v56_v9 }
  0xc2   :  { %v121_v10 = vpop.trf.xlu1 }
  0xc3   :  { %202 = vst.msk [vmem:[%s540_s1 + $0x110] sm:$0xff] %vm167_vm0, %v121_v10  ;;  %v57_v11 = vpop.trf.xlu0 }
  0xc4   :  { %170 = vst.msk [vmem:[%s540_s1 + $0x10] sm:$0xff] %vm167_vm0, %v57_v11 }
  0xca   :  { %v122_v12 = vpop.trf.xlu1 }
  0xcb   :  { %203 = vst.msk [vmem:[%s540_s1 + $0x118] sm:$0xff] %vm167_vm0, %v122_v12  ;;  %v58_v13 = vpop.trf.xlu0 }
  0xcc   :  { %171 = vst.msk [vmem:[%s540_s1 + $0x18] sm:$0xff] %vm167_vm0, %v58_v13 }
  0xd2   :  { %v123_v14 = vpop.trf.xlu1 }
  0xd3   :  { %204 = vst.msk [vmem:[%s540_s1 + $0x120] sm:$0xff] %vm167_vm0, %v123_v14  ;;  %v59_v15 = vpop.trf.xlu0 }
  0xd4   :  { %172 = vst.msk [vmem:[%s540_s1 + $0x20] sm:$0xff] %vm167_vm0, %v59_v15 }
  0xda   :  { %v124_v16 = vpop.trf.xlu1 }
  0xdb   :  { %205 = vst.msk [vmem:[%s540_s1 + $0x128] sm:$0xff] %vm167_vm0, %v124_v16  ;;  %v60_v17 = vpop.trf.xlu0 }
  0xdc   :  { %173 = vst.msk [vmem:[%s540_s1 + $0x28] sm:$0xff] %vm167_vm0, %v60_v17 }
  0xe2   :  { %v125_v18 = vpop.trf.xlu1 }
  0xe3   :  { %206 = vst.msk [vmem:[%s540_s1 + $0x130] sm:$0xff] %vm167_vm0, %v125_v18  ;;  %v61_v19 = vpop.trf.xlu0 }
  0xe4   :  { %174 = vst.msk [vmem:[%s540_s1 + $0x30] sm:$0xff] %vm167_vm0, %v61_v19 }
  0xea   :  { %v126_v20 = vpop.trf.xlu1 }
  0xeb   :  { %207 = vst.msk [vmem:[%s540_s1 + $0x138] sm:$0xff] %vm167_vm0, %v126_v20  ;;  %v62_v21 = vpop.trf.xlu0 }
  0xec   :  { %175 = vst.msk [vmem:[%s540_s1 + $0x38] sm:$0xff] %vm167_vm0, %v62_v21 }
  0xf2   :  { %v127_v22 = vpop.trf.xlu1 }
  0xf3   :  { %208 = vst.msk [vmem:[%s540_s1 + $0x140] sm:$0xff] %vm167_vm0, %v127_v22  ;;  %v63_v23 = vpop.trf.xlu0 }
  0xf4   :  { %176 = vst.msk [vmem:[%s540_s1 + $0x40] sm:$0xff] %vm167_vm0, %v63_v23 }
  0xfa   :  { %v128_v24 = vpop.trf.xlu1 }
  0xfb   :  { %209 = vst.msk [vmem:[%s540_s1 + $0x148] sm:$0xff] %vm167_vm0, %v128_v24  ;;  %v64_v25 = vpop.trf.xlu0 }
  0xfc   :  { %177 = vst.msk [vmem:[%s540_s1 + $0x48] sm:$0xff] %vm167_vm0, %v64_v25 }
 0x102   :  { %v129_v26 = vpop.trf.xlu1 }
 0x103   :  { %210 = vst.msk [vmem:[%s540_s1 + $0x150] sm:$0xff] %vm167_vm0, %v129_v26  ;;  %v65_v27 = vpop.trf.xlu0 }
 0x104   :  { %178 = vst.msk [vmem:[%s540_s1 + $0x50] sm:$0xff] %vm167_vm0, %v65_v27 }
 0x10a   :  { %v130_v28 = vpop.trf.xlu1 }
 0x10b   :  { %211 = vst.msk [vmem:[%s540_s1 + $0x158] sm:$0xff] %vm167_vm0, %v130_v28  ;;  %v66_v29 = vpop.trf.xlu0 }
 0x10c   :  { %179 = vst.msk [vmem:[%s540_s1 + $0x58] sm:$0xff] %vm167_vm0, %v66_v29 }
 0x112   :  { %v131_v30 = vpop.trf.xlu1 }
 0x113   :  { %212 = vst.msk [vmem:[%s540_s1 + $0x160] sm:$0xff] %vm167_vm0, %v131_v30  ;;  %v67_v31 = vpop.trf.xlu0 }
 0x114   :  { %180 = vst.msk [vmem:[%s540_s1 + $0x60] sm:$0xff] %vm167_vm0, %v67_v31 }
 0x11a   :  { %v132_v32 = vpop.trf.xlu1 }
 0x11b   :  { %213 = vst.msk [vmem:[%s540_s1 + $0x168] sm:$0xff] %vm167_vm0, %v132_v32  ;;  %v68_v33 = vpop.trf.xlu0 }
 0x11c   :  { %181 = vst.msk [vmem:[%s540_s1 + $0x68] sm:$0xff] %vm167_vm0, %v68_v33 }
 0x122   :  { %v133_v34 = vpop.trf.xlu1 }
 0x123   :  { %214 = vst.msk [vmem:[%s540_s1 + $0x170] sm:$0xff] %vm167_vm0, %v133_v34  ;;  %v69_v35 = vpop.trf.xlu0 }
 0x124   :  { %182 = vst.msk [vmem:[%s540_s1 + $0x70] sm:$0xff] %vm167_vm0, %v69_v35 }
 0x12a   :  { %v134_v36 = vpop.trf.xlu1 }
 0x12b   :  { %215 = vst.msk [vmem:[%s540_s1 + $0x178] sm:$0xff] %vm167_vm0, %v134_v36  ;;  %v70_v37 = vpop.trf.xlu0 }
 0x12c   :  { %183 = vst.msk [vmem:[%s540_s1 + $0x78] sm:$0xff] %vm167_vm0, %v70_v37 }
 0x132   :  { %v151_v38 = vpop.trf.xlu1 }
 0x133   :  { %216 = vst.msk [vmem:[%s540_s1 + $0x180] sm:$0xff] %vm167_vm0, %v151_v38  ;;  %v87_v39 = vpop.trf.xlu0 }
 0x134   :  { %184 = vst.msk [vmem:[%s540_s1 + $0x80] sm:$0xff] %vm167_vm0, %v87_v39 }
 0x13a   :  { %v152_v40 = vpop.trf.xlu1 }
 0x13b   :  { %217 = vst.msk [vmem:[%s540_s1 + $0x188] sm:$0xff] %vm167_vm0, %v152_v40  ;;  %v88_v41 = vpop.trf.xlu0 }
 0x13c   :  { %185 = vst.msk [vmem:[%s540_s1 + $0x88] sm:$0xff] %vm167_vm0, %v88_v41 }
 0x142   :  { %v153_v42 = vpop.trf.xlu1 }
 0x143   :  { %218 = vst.msk [vmem:[%s540_s1 + $0x190] sm:$0xff] %vm167_vm0, %v153_v42  ;;  %v89_v43 = vpop.trf.xlu0 }
 0x144   :  { %186 = vst.msk [vmem:[%s540_s1 + $0x90] sm:$0xff] %vm167_vm0, %v89_v43 }
 0x14a   :  { %v154_v44 = vpop.trf.xlu1 }
 0x14b   :  { %219 = vst.msk [vmem:[%s540_s1 + $0x198] sm:$0xff] %vm167_vm0, %v154_v44  ;;  %v90_v45 = vpop.trf.xlu0 }
 0x14c   :  { %187 = vst.msk [vmem:[%s540_s1 + $0x98] sm:$0xff] %vm167_vm0, %v90_v45 }
 0x152   :  { %v155_v46 = vpop.trf.xlu1 }
 0x153   :  { %220 = vst.msk [vmem:[%s540_s1 + $0x1a0] sm:$0xff] %vm167_vm0, %v155_v46  ;;  %v91_v47 = vpop.trf.xlu0 }
 0x154   :  { %188 = vst.msk [vmem:[%s540_s1 + $0xa0] sm:$0xff] %vm167_vm0, %v91_v47 }
 0x15a   :  { %v156_v48 = vpop.trf.xlu1 }
 0x15b   :  { %221 = vst.msk [vmem:[%s540_s1 + $0x1a8] sm:$0xff] %vm167_vm0, %v156_v48  ;;  %v92_v49 = vpop.trf.xlu0 }
 0x15c   :  { %189 = vst.msk [vmem:[%s540_s1 + $0xa8] sm:$0xff] %vm167_vm0, %v92_v49 }
 0x162   :  { %v157_v50 = vpop.trf.xlu1 }
 0x163   :  { %222 = vst.msk [vmem:[%s540_s1 + $0x1b0] sm:$0xff] %vm167_vm0, %v157_v50  ;;  %v93_v51 = vpop.trf.xlu0 }
 0x164   :  { %190 = vst.msk [vmem:[%s540_s1 + $0xb0] sm:$0xff] %vm167_vm0, %v93_v51 }
 0x16a   :  { %v158_v52 = vpop.trf.xlu1 }
 0x16b   :  { %223 = vst.msk [vmem:[%s540_s1 + $0x1b8] sm:$0xff] %vm167_vm0, %v158_v52  ;;  %v94_v53 = vpop.trf.xlu0 }
 0x16c   :  { %191 = vst.msk [vmem:[%s540_s1 + $0xb8] sm:$0xff] %vm167_vm0, %v94_v53 }
 0x172   :  { %v159_v54 = vpop.trf.xlu1 }
 0x173   :  { %224 = vst.msk [vmem:[%s540_s1 + $0x1c0] sm:$0xff] %vm167_vm0, %v159_v54  ;;  %v95_v55 = vpop.trf.xlu0 }
 0x174   :  { %192 = vst.msk [vmem:[%s540_s1 + $0xc0] sm:$0xff] %vm167_vm0, %v95_v55 }
 0x17a   :  { %v160_v56 = vpop.trf.xlu1 }
 0x17b   :  { %225 = vst.msk [vmem:[%s540_s1 + $0x1c8] sm:$0xff] %vm167_vm0, %v160_v56  ;;  %v96_v57 = vpop.trf.xlu0 }
 0x17c   :  { %193 = vst.msk [vmem:[%s540_s1 + $0xc8] sm:$0xff] %vm167_vm0, %v96_v57 }
 0x182   :  { %v161_v58 = vpop.trf.xlu1 }
 0x183   :  { %226 = vst.msk [vmem:[%s540_s1 + $0x1d0] sm:$0xff] %vm167_vm0, %v161_v58  ;;  %v97_v59 = vpop.trf.xlu0 }
 0x184   :  { %194 = vst.msk [vmem:[%s540_s1 + $0xd0] sm:$0xff] %vm167_vm0, %v97_v59 }
 0x18a   :  { %v162_v60 = vpop.trf.xlu1 }
 0x18b   :  { %227 = vst.msk [vmem:[%s540_s1 + $0x1d8] sm:$0xff] %vm167_vm0, %v162_v60  ;;  %v98_v61 = vpop.trf.xlu0 }
 0x18c   :  { %195 = vst.msk [vmem:[%s540_s1 + $0xd8] sm:$0xff] %vm167_vm0, %v98_v61 }
 0x192   :  { %v163_v62 = vpop.trf.xlu1 }
 0x193   :  { %228 = vst.msk [vmem:[%s540_s1 + $0x1e0] sm:$0xff] %vm167_vm0, %v163_v62  ;;  %v99_v63 = vpop.trf.xlu0 }
 0x194   :  { %196 = vst.msk [vmem:[%s540_s1 + $0xe0] sm:$0xff] %vm167_vm0, %v99_v63 }
 0x19a   :  { %v164_v0 = vpop.trf.xlu1 }
 0x19b   :  { %229 = vst.msk [vmem:[%s540_s1 + $0x1e8] sm:$0xff] %vm167_vm0, %v164_v0  ;;  %v100_v1 = vpop.trf.xlu0 }
 0x19c   :  { %197 = vst.msk [vmem:[%s540_s1 + $0xe8] sm:$0xff] %vm167_vm0, %v100_v1 }
 0x1a2   :  { %v165_v2 = vpop.trf.xlu1 }
 0x1a3   :  { %230 = vst.msk [vmem:[%s540_s1 + $0x1f0] sm:$0xff] %vm167_vm0, %v165_v2  ;;  %v101_v3 = vpop.trf.xlu0 }
 0x1a4   :  { %198 = vst.msk [vmem:[%s540_s1 + $0xf0] sm:$0xff] %vm167_vm0, %v101_v3 }
 0x1aa   :  { %v166_v4 = vpop.trf.xlu1 }
 0x1ab   :  { %231 = vst.msk [vmem:[%s540_s1 + $0x1f8] sm:$0xff] %vm167_vm0, %v166_v4  ;;  %v102_v5 = vpop.trf.xlu0 }
 0x1ac   :  { %199 = vst.msk [vmem:[%s540_s1 + $0xf8] sm:$0xff] %vm167_vm0, %v102_v5 }
 0x1ad   :  { %236 = vsyncpa [#allocation3], 1 }

</bundles_post_ra>
